<compile_context>
chip_gen: v6e
topology: v6e:2x2x1
jax: 0.10.0
libtpu: 0.0.40
codegen_flags: <defaults>
</compile_context>

<pallas_src>
import jax
import jax.numpy as jnp
from jax.experimental import pallas as pl
from jax.experimental.pallas import tpu as pltpu

_EPS = 1e-5


def _round_up(n, m):
    return ((n + m - 1) // m) * m


def _cdiv(a, b):
    return -(-a // b)


# --------------------------------------------------------------------------
# Kernel
# --------------------------------------------------------------------------
def predictor_kernel(x_ref,
                     w1_ref, b1_ref,
                     w2_ref, b2_ref,
                     w3_ref, b3_ref,
                     s3_ref, t3_ref,
                     w4_ref, b4_ref,
                     o_ref):
    """One batch tile through the whole MLP. BN0/1/2 are pre-folded into w1/w2/w3."""
    bf16 = jnp.bfloat16

    # ---- [BN0 folded] Linear(F->128) + ReLU.  Pure f32 (K=16, nearly free). ----
    h = jnp.dot(x_ref[...], w1_ref[...], preferred_element_type=jnp.float32)
    h = jnp.maximum(h + b1_ref[...], 0.0).astype(bf16)

    # ---- [BN1 folded] Linear(128->256) + ReLU (bf16 matmul, f32 accum). ----
    h = jnp.dot(h, w2_ref[...], preferred_element_type=jnp.float32)
    h = jnp.maximum(h + b2_ref[...], 0.0).astype(bf16)

    # ---- [BN2 folded] Linear(256->128) + ReLU. ----
    h = jnp.dot(h, w3_ref[...], preferred_element_type=jnp.float32)
    h = jnp.maximum(h + b3_ref[...], 0.0)

    # ---- BatchNorm1d(128) (not foldable: ReLU precedes the last Linear),
    #      Dropout(p=0.2) == identity in eval mode, ReLU.  Elementwise in f32. ----
    h = jnp.maximum(h * s3_ref[...] + t3_ref[...], 0.0).astype(bf16)

    # ---- Linear(128 -> 2) + ReLU; narrow 2-lane store straight to the output. ----
    h = jnp.dot(h, w4_ref[...], preferred_element_type=jnp.float32)
    o_ref[...] = jnp.maximum(h + b4_ref[...], 0.0)


# --------------------------------------------------------------------------
# Parameter preparation (constant-time wrapper glue, done once)
# --------------------------------------------------------------------------
def prepare_params(raw):
    """Fold eval-mode BN affines into adjacent Linears; no padding anywhere.
    w1 stays f32 (precision of the raw-feature matmul); w2/w3/w4 go bf16."""
    (g0, be0, m0, v0, w1, b1,
     g1, be1, m1, v1, w2, b2,
     g2, be2, m2, v2, w3, b3,
     g3, be3, m3, v3, w4, b4) = raw

    def affine(g, be, m, v):
        s = g / jnp.sqrt(v + _EPS)
        return s, be - m * s

    s0, t0 = affine(g0, be0, m0, v0)
    s1, t1 = affine(g1, be1, m1, v1)
    s2, t2 = affine(g2, be2, m2, v2)
    s3, t3 = affine(g3, be3, m3, v3)

    # (x * s + t) @ W + b  ==  x @ (s[:,None] * W) + (t @ W + b)
    def fold(s, t, w, b):
        return w * s[:, None], b + t @ w

    w1f, b1f = fold(s0, t0, w1, b1)
    w2f, b2f = fold(s1, t1, w2, b2)
    w3f, b3f = fold(s2, t2, w3, b3)

    f32, bf16 = jnp.float32, jnp.bfloat16
    return (w1f.astype(f32),  b1f.reshape(1, -1).astype(f32),
            w2f.astype(bf16), b2f.reshape(1, -1).astype(f32),
            w3f.astype(bf16), b3f.reshape(1, -1).astype(f32),
            s3.reshape(1, -1).astype(f32), t3.reshape(1, -1).astype(f32),
            w4.astype(bf16),  b4.reshape(1, -1).astype(f32))


# --------------------------------------------------------------------------
# Wrapper
# --------------------------------------------------------------------------
def _pick_batch_tile(B, target=2048):
    """Rows per grid step: multiple of 8 (sublane), capped at `target`.
    Batches big enough to split get >= 2 steps so both v7x TensorCores work."""
    if B <= 256:
        return _round_up(max(B, 8), 8)          # single exact-ish tile
    n_steps = max(2, _cdiv(B, target))
    return _round_up(_cdiv(B, n_steps), 128)


def predictor_forward(x, prep, *, tb_target=2048):
    """x: [B, n_type] float32.  prep: output of prepare_params(raw)."""
    (w1, b1, w2, b2, w3, b3, s3, t3, w4, b4) = prep
    B, F = x.shape
    assert F == w1.shape[0]
    No = w4.shape[1]

    tb = _pick_batch_tile(B, tb_target)
    grid = (pl.cdiv(B, tb),)

    def full(a):
        shp = a.shape
        return pl.BlockSpec(shp, lambda i, _s=shp: (0,) * len(_s))

    # x block (tb, F): F == full last dim, tb multiple of 8 -> legal, lane-light DMA.
    # out block (tb, No): No == full last dim -> legal narrow store, no padded slab.
    in_specs = [pl.BlockSpec((tb, F), lambda i: (i, 0))] + [full(p) for p in prep]
    out_specs = pl.BlockSpec((tb, No), lambda i: (i, 0))

    param_bytes = sum(int(p.size) * p.dtype.itemsize for p in prep)
    flops = 2 * B * (F * 128 + 128 * 256 + 256 * 128 + 128 * No)
    bytes_accessed = B * F * 4 + param_bytes + B * No * 4

    out = pl.pallas_call(
        predictor_kernel,
        out_shape=jax.ShapeDtypeStruct((B, No), jnp.float32),
        grid_spec=pltpu.PrefetchScalarGridSpec(
            num_scalar_prefetch=0,
            grid=grid,
            in_specs=in_specs,
            out_specs=out_specs,
        ),
        compiler_params=pltpu.CompilerParams(
            dimension_semantics=("parallel",)),
        cost_estimate=pl.CostEstimate(
            flops=int(flops), transcendentals=0,
            bytes_accessed=int(bytes_accessed)),
    )(x, *prep)

    return out


# --------------------------------------------------------------------------
# Synthetic parameters + references
# --------------------------------------------------------------------------
def make_raw_params(key, n_type):
    """Deterministic synthetic parameters matching the PyTorch module shapes."""
    ks = jax.random.split(key, 24)
    ki = iter(ks)

    def bn(c):
        gamma = jax.random.uniform(next(ki), (c,), jnp.float32, 0.5, 1.5)
        beta = jax.random.normal(next(ki), (c,), jnp.float32) * 0.1
        rmean = jax.random.normal(next(ki), (c,), jnp.float32) * 0.1
        rvar = jax.random.uniform(next(ki), (c,), jnp.float32, 0.5, 1.5)
        return gamma, beta, rmean, rvar

    def lin(cin, cout):
        bound = 1.0 / float(jnp.sqrt(jnp.float32(cin)))
        w = jax.random.uniform(next(ki), (cin, cout), jnp.float32, -bound, bound)
        b = jax.random.uniform(next(ki), (cout,), jnp.float32, -bound, bound)
        return w, b

    g0, be0, m0, v0 = bn(n_type)
    w1, b1 = lin(n_type, 128)
    g1, be1, m1, v1 = bn(128)
    w2, b2 = lin(128, 256)
    g2, be2, m2, v2 = bn(256)
    w3, b3 = lin(256, 128)
    g3, be3, m3, v3 = bn(128)
    w4, b4 = lin(128, 2)
    return (g0, be0, m0, v0, w1, b1,
            g1, be1, m1, v1, w2, b2,
            g2, be2, m2, v2, w3, b3,
            g3, be3, m3, v3, w4, b4)


def predictor_ref_f32(x, raw):
    """Original module semantics, pure f32 (eval mode)."""
    (g0, be0, m0, v0, w1, b1,
     g1, be1, m1, v1, w2, b2,
     g2, be2, m2, v2, w3, b3,
     g3, be3, m3, v3, w4, b4) = raw

    def bn(h, g, be, m, v):
        return (h - m) / jnp.sqrt(v + _EPS) * g + be

    h = bn(x, g0, be0, m0, v0)
    h = jnp.maximum(h @ w1 + b1, 0.0)
    h = bn(h, g1, be1, m1, v1)
    h = jnp.maximum(h @ w2 + b2, 0.0)
    h = bn(h, g2, be2, m2, v2)
    h = jnp.maximum(h @ w3 + b3, 0.0)
    h = bn(h, g3, be3, m3, v3)
    # Dropout: identity in eval mode.
    h = jnp.maximum(h, 0.0)
    return jnp.maximum(h @ w4 + b4, 0.0)


def predictor_ref_prepared(x, prep):
    """Same folded / mixed-precision math as the kernel, in plain jnp."""
    (w1, b1, w2, b2, w3, b3, s3, t3, w4, b4) = prep
    bf16 = jnp.bfloat16
    h = jnp.dot(x, w1, preferred_element_type=jnp.float32)
    h = jnp.maximum(h + b1, 0.0).astype(bf16)
    h = jnp.dot(h, w2, preferred_element_type=jnp.float32)
    h = jnp.maximum(h + b2, 0.0).astype(bf16)
    h = jnp.dot(h, w3, preferred_element_type=jnp.float32)
    h = jnp.maximum(h + b3, 0.0)
    h = jnp.maximum(h * s3 + t3, 0.0).astype(bf16)
    h = jnp.dot(h, w4, preferred_element_type=jnp.float32)
    return jnp.maximum(h + b4, 0.0)


# --------------------------------------------------------------------------
if __name__ == "__main__":
    n_type = 16

    key = jax.random.PRNGKey(0)
    kx, kx2, kp = jax.random.split(key, 3)
    raw = make_raw_params(kp, n_type)
    prep = prepare_params(raw)

    # --- small batch: single grid step, exact tile ---
    batch = 8
    x = jax.random.normal(kx, (batch, n_type), jnp.float32)
    out = jax.block_until_ready(predictor_forward(x, prep))
    assert out.shape == (batch, 2)
    assert jnp.allclose(out, predictor_ref_prepared(x, prep), atol=2e-3, rtol=2e-3)
    assert jnp.allclose(out, predictor_ref_f32(x, raw), atol=5e-2, rtol=5e-2)

    # --- larger batch: 2 grid steps with a partial last block ---
    batch2 = 300
    x2 = jax.random.normal(kx2, (batch2, n_type), jnp.float32)
    out2 = jax.block_until_ready(predictor_forward(x2, prep))
    assert out2.shape == (batch2, 2)
    assert jnp.allclose(out2, predictor_ref_prepared(x2, prep), atol=2e-3, rtol=2e-3)
    assert jnp.allclose(out2, predictor_ref_f32(x2, raw), atol=5e-2, rtol=5e-2)

    print("KERNEL_OK")
</pallas_src>

<mosaic_0001>
module attributes {stable_mosaic.version = 11 : i64} {
  func.func @predictor_kernel(%arg0: i32, %arg1: memref<8x16xf32, #tpu.memory_space<vmem>>, %arg2: memref<16x128xf32, #tpu.memory_space<vmem>>, %arg3: memref<1x128xf32, #tpu.memory_space<vmem>>, %arg4: memref<128x256xbf16, #tpu.memory_space<vmem>>, %arg5: memref<1x256xf32, #tpu.memory_space<vmem>>, %arg6: memref<256x128xbf16, #tpu.memory_space<vmem>>, %arg7: memref<1x128xf32, #tpu.memory_space<vmem>>, %arg8: memref<1x128xf32, #tpu.memory_space<vmem>>, %arg9: memref<1x128xf32, #tpu.memory_space<vmem>>, %arg10: memref<128x2xbf16, #tpu.memory_space<vmem>>, %arg11: memref<1x2xf32, #tpu.memory_space<vmem>>, %arg12: memref<8x2xf32, #tpu.memory_space<vmem>>) attributes {dimension_semantics = [#tpu.dimension_semantics<parallel>], iteration_bounds = array<i64: 1>, scalar_prefetch = 0 : i64, scratch_operands = 0 : i64, tpu.core_type = #tpu.core_type<tc>, window_params = [{transform_indices = @transform_0, window_bounds = array<i64: 8, 16>}, {pipeline_mode = #tpu.pipeline_mode<synchronous>, transform_indices = @transform_1, window_bounds = array<i64: 16, 128>}, {pipeline_mode = #tpu.pipeline_mode<synchronous>, transform_indices = @transform_2, window_bounds = array<i64: 1, 128>}, {pipeline_mode = #tpu.pipeline_mode<synchronous>, transform_indices = @transform_3, window_bounds = array<i64: 128, 256>}, {pipeline_mode = #tpu.pipeline_mode<synchronous>, transform_indices = @transform_4, window_bounds = array<i64: 1, 256>}, {pipeline_mode = #tpu.pipeline_mode<synchronous>, transform_indices = @transform_5, window_bounds = array<i64: 256, 128>}, {pipeline_mode = #tpu.pipeline_mode<synchronous>, transform_indices = @transform_6, window_bounds = array<i64: 1, 128>}, {pipeline_mode = #tpu.pipeline_mode<synchronous>, transform_indices = @transform_7, window_bounds = array<i64: 1, 128>}, {pipeline_mode = #tpu.pipeline_mode<synchronous>, transform_indices = @transform_8, window_bounds = array<i64: 1, 128>}, {pipeline_mode = #tpu.pipeline_mode<synchronous>, transform_indices = @transform_9, window_bounds = array<i64: 128, 2>}, {pipeline_mode = #tpu.pipeline_mode<synchronous>, transform_indices = @transform_10, window_bounds = array<i64: 1, 2>}, {transform_indices = @transform_11, window_bounds = array<i64: 8, 2>}]} {
    %c0 = arith.constant 0 : index
    %c0_0 = arith.constant 0 : index
    %0 = vector.load %arg1[%c0, %c0_0] : memref<8x16xf32, #tpu.memory_space<vmem>>, vector<8x16xf32>
    %c0_1 = arith.constant 0 : index
    %c0_2 = arith.constant 0 : index
    %1 = vector.load %arg2[%c0_1, %c0_2] : memref<16x128xf32, #tpu.memory_space<vmem>>, vector<16x128xf32>
    %cst = arith.constant dense<0.000000e+00> : vector<8x128xf32>
    %2 = tpu.matmul %0, %1, %cst {dimension_numbers = #tpu.dot_dimension_numbers<[1], [0], [0], [1], [0, 0, 1, 1], [], []>} : vector<8x16xf32>, vector<16x128xf32>, vector<8x128xf32> -> vector<8x128xf32>
    %c0_3 = arith.constant 0 : index
    %c0_4 = arith.constant 0 : index
    %3 = vector.load %arg3[%c0_3, %c0_4] : memref<1x128xf32, #tpu.memory_space<vmem>>, vector<1x128xf32>
    %4 = vector.broadcast %3 : vector<1x128xf32> to vector<8x128xf32>
    %5 = arith.addf %2, %4 : vector<8x128xf32>
    %cst_5 = arith.constant 0.000000e+00 : f32
    %6 = vector.broadcast %cst_5 : f32 to vector<8x128xf32>
    %7 = arith.maximumf %5, %6 : vector<8x128xf32>
    %8 = arith.truncf %7 : vector<8x128xf32> to vector<8x128xbf16>
    %c0_6 = arith.constant 0 : index
    %c0_7 = arith.constant 0 : index
    %9 = vector.load %arg4[%c0_6, %c0_7] : memref<128x256xbf16, #tpu.memory_space<vmem>>, vector<128x256xbf16>
    %cst_8 = arith.constant dense<0.000000e+00> : vector<8x256xf32>
    %10 = tpu.matmul %8, %9, %cst_8 {dimension_numbers = #tpu.dot_dimension_numbers<[1], [0], [0], [1], [0, 0, 1, 1], [], []>} : vector<8x128xbf16>, vector<128x256xbf16>, vector<8x256xf32> -> vector<8x256xf32>
    %c0_9 = arith.constant 0 : index
    %c0_10 = arith.constant 0 : index
    %11 = vector.load %arg5[%c0_9, %c0_10] : memref<1x256xf32, #tpu.memory_space<vmem>>, vector<1x256xf32>
    %12 = vector.broadcast %11 : vector<1x256xf32> to vector<8x256xf32>
    %13 = arith.addf %10, %12 : vector<8x256xf32>
    %cst_11 = arith.constant 0.000000e+00 : f32
    %14 = vector.broadcast %cst_11 : f32 to vector<8x256xf32>
    %15 = arith.maximumf %13, %14 : vector<8x256xf32>
    %16 = arith.truncf %15 : vector<8x256xf32> to vector<8x256xbf16>
    %c0_12 = arith.constant 0 : index
    %c0_13 = arith.constant 0 : index
    %17 = vector.load %arg6[%c0_12, %c0_13] : memref<256x128xbf16, #tpu.memory_space<vmem>>, vector<256x128xbf16>
    %cst_14 = arith.constant dense<0.000000e+00> : vector<8x128xf32>
    %18 = tpu.matmul %16, %17, %cst_14 {dimension_numbers = #tpu.dot_dimension_numbers<[1], [0], [0], [1], [0, 0, 1, 1], [], []>} : vector<8x256xbf16>, vector<256x128xbf16>, vector<8x128xf32> -> vector<8x128xf32>
    %c0_15 = arith.constant 0 : index
    %c0_16 = arith.constant 0 : index
    %19 = vector.load %arg7[%c0_15, %c0_16] : memref<1x128xf32, #tpu.memory_space<vmem>>, vector<1x128xf32>
    %20 = vector.broadcast %19 : vector<1x128xf32> to vector<8x128xf32>
    %21 = arith.addf %18, %20 : vector<8x128xf32>
    %cst_17 = arith.constant 0.000000e+00 : f32
    %22 = vector.broadcast %cst_17 : f32 to vector<8x128xf32>
    %23 = arith.maximumf %21, %22 : vector<8x128xf32>
    %c0_18 = arith.constant 0 : index
    %c0_19 = arith.constant 0 : index
    %24 = vector.load %arg8[%c0_18, %c0_19] : memref<1x128xf32, #tpu.memory_space<vmem>>, vector<1x128xf32>
    %25 = vector.broadcast %24 : vector<1x128xf32> to vector<8x128xf32>
    %26 = arith.mulf %23, %25 : vector<8x128xf32>
    %c0_20 = arith.constant 0 : index
    %c0_21 = arith.constant 0 : index
    %27 = vector.load %arg9[%c0_20, %c0_21] : memref<1x128xf32, #tpu.memory_space<vmem>>, vector<1x128xf32>
    %28 = vector.broadcast %27 : vector<1x128xf32> to vector<8x128xf32>
    %29 = arith.addf %26, %28 : vector<8x128xf32>
    %cst_22 = arith.constant 0.000000e+00 : f32
    %30 = vector.broadcast %cst_22 : f32 to vector<8x128xf32>
    %31 = arith.maximumf %29, %30 : vector<8x128xf32>
    %32 = arith.truncf %31 : vector<8x128xf32> to vector<8x128xbf16>
    %c0_23 = arith.constant 0 : index
    %c0_24 = arith.constant 0 : index
    %33 = vector.load %arg10[%c0_23, %c0_24] : memref<128x2xbf16, #tpu.memory_space<vmem>>, vector<128x2xbf16>
    %cst_25 = arith.constant dense<0.000000e+00> : vector<8x2xf32>
    %34 = tpu.matmul %32, %33, %cst_25 {dimension_numbers = #tpu.dot_dimension_numbers<[1], [0], [0], [1], [0, 0, 1, 1], [], []>} : vector<8x128xbf16>, vector<128x2xbf16>, vector<8x2xf32> -> vector<8x2xf32>
    %c0_26 = arith.constant 0 : index
    %c0_27 = arith.constant 0 : index
    %35 = vector.load %arg11[%c0_26, %c0_27] : memref<1x2xf32, #tpu.memory_space<vmem>>, vector<1x2xf32>
    %36 = vector.broadcast %35 : vector<1x2xf32> to vector<8x2xf32>
    %37 = arith.addf %34, %36 : vector<8x2xf32>
    %cst_28 = arith.constant 0.000000e+00 : f32
    %38 = vector.broadcast %cst_28 : f32 to vector<8x2xf32>
    %39 = arith.maximumf %37, %38 : vector<8x2xf32>
    %c0_29 = arith.constant 0 : index
    %c0_30 = arith.constant 0 : index
    %40 = vector.load %arg12[%c0_29, %c0_30] : memref<8x2xf32, #tpu.memory_space<vmem>>, vector<8x2xf32>
    tpu.vector_store %arg12[%c0_29, %c0_30], %39 {strides = array<i32>} : memref<8x2xf32, #tpu.memory_space<vmem>>, vector<8x2xf32>,
    return
  }
  func.func @transform_0(%arg0: i32) -> (i32, i32) {
    %c0_i32 = arith.constant 0 : i32
    %c0_i32_0 = arith.constant 0 : i32
    return %arg0, %c0_i32 : i32, i32
  }
  func.func @transform_1(%arg0: i32) -> (i32, i32) {
    %c0_i32 = arith.constant 0 : i32
    %c0_i32_0 = arith.constant 0 : i32
    %c0_i32_1 = arith.constant 0 : i32
    return %c0_i32, %c0_i32_0 : i32, i32
  }
  func.func @transform_2(%arg0: i32) -> (i32, i32) {
    %c0_i32 = arith.constant 0 : i32
    %c0_i32_0 = arith.constant 0 : i32
    %c0_i32_1 = arith.constant 0 : i32
    return %c0_i32, %c0_i32_0 : i32, i32
  }
  func.func @transform_3(%arg0: i32) -> (i32, i32) {
    %c0_i32 = arith.constant 0 : i32
    %c0_i32_0 = arith.constant 0 : i32
    %c0_i32_1 = arith.constant 0 : i32
    return %c0_i32, %c0_i32_0 : i32, i32
  }
  func.func @transform_4(%arg0: i32) -> (i32, i32) {
    %c0_i32 = arith.constant 0 : i32
    %c0_i32_0 = arith.constant 0 : i32
    %c0_i32_1 = arith.constant 0 : i32
    return %c0_i32, %c0_i32_0 : i32, i32
  }
  func.func @transform_5(%arg0: i32) -> (i32, i32) {
    %c0_i32 = arith.constant 0 : i32
    %c0_i32_0 = arith.constant 0 : i32
    %c0_i32_1 = arith.constant 0 : i32
    return %c0_i32, %c0_i32_0 : i32, i32
  }
  func.func @transform_6(%arg0: i32) -> (i32, i32) {
    %c0_i32 = arith.constant 0 : i32
    %c0_i32_0 = arith.constant 0 : i32
    %c0_i32_1 = arith.constant 0 : i32
    return %c0_i32, %c0_i32_0 : i32, i32
  }
  func.func @transform_7(%arg0: i32) -> (i32, i32) {
    %c0_i32 = arith.constant 0 : i32
    %c0_i32_0 = arith.constant 0 : i32
    %c0_i32_1 = arith.constant 0 : i32
    return %c0_i32, %c0_i32_0 : i32, i32
  }
  func.func @transform_8(%arg0: i32) -> (i32, i32) {
    %c0_i32 = arith.constant 0 : i32
    %c0_i32_0 = arith.constant 0 : i32
    %c0_i32_1 = arith.constant 0 : i32
    return %c0_i32, %c0_i32_0 : i32, i32
  }
  func.func @transform_9(%arg0: i32) -> (i32, i32) {
    %c0_i32 = arith.constant 0 : i32
    %c0_i32_0 = arith.constant 0 : i32
    %c0_i32_1 = arith.constant 0 : i32
    return %c0_i32, %c0_i32_0 : i32, i32
  }
  func.func @transform_10(%arg0: i32) -> (i32, i32) {
    %c0_i32 = arith.constant 0 : i32
    %c0_i32_0 = arith.constant 0 : i32
    %c0_i32_1 = arith.constant 0 : i32
    return %c0_i32, %c0_i32_0 : i32, i32
  }
  func.func @transform_11(%arg0: i32) -> (i32, i32) {
    %c0_i32 = arith.constant 0 : i32
    %c0_i32_0 = arith.constant 0 : i32
    return %arg0, %c0_i32 : i32, i32
  }
}

</mosaic_0001>

<bundles_post_ra>
// kernel: tpu_custom_call.1
= control target key start
LH: loop header
LB: loop body
LE: loop exit
PB: predicated region body
PF: predicated region fallthrough
CT: control target
= control target key end

     0   :  { %16 = vsyncpa [#allocation3], 0  ;;  %s971_s0 = inlined_call_operand.vmem [shape: f32[8,16], index: 0, kind: input, shape index: {}]   ;;  %s972_s1 = inlined_call_operand.vmem [shape: f32[16,128], index: 1, kind: input, shape index: {}]   ;;  %s973_s2 = inlined_call_operand.vmem [shape: f32[1,128], index: 2, kind: input, shape index: {}]   ;;  %s974_s3 = inlined_call_operand.hbm [shape: bf16[128,256], index: 3, kind: input, shape index: {}]   ;;  %s975_s4 = inlined_call_operand.vmem [shape: f32[1,256], index: 4, kind: input, shape index: {}]   ;;  %s976_s5 = inlined_call_operand.hbm [shape: bf16[256,128], index: 5, kind: input, shape index: {}]   ;;  %s977_s6 = inlined_call_operand.vmem [shape: f32[1,128], index: 6, kind: input, shape index: {}]   ;;  %s978_s7 = inlined_call_operand.vmem [shape: f32[1,128], index: 7, kind: input, shape index: {}]   ;;  %s979_s8 = inlined_call_operand.vmem [shape: f32[1,128], index: 8, kind: input, shape index: {}]   ;;  %s980_s9 = inlined_call_operand.vmem [shape: bf16[128,2], index: 9, kind: input, shape index: {}]   ;;  %s981_s10 = inlined_call_operand.vmem [shape: f32[1,2], index: 10, kind: input, shape index: {}]   ;;  %s982_s11 = inlined_call_operand.vmem [shape: f32[8,2], index: 11, kind: output, shape index: {}]  }
   0x1   :  { %17 = vsyncpa [#allocation5], 0  ;;  %s828_s17 = smov [#allocation2]  }
   0x2   :  { %s29_s18 = sshll.u32 %s828_s17, 4  ;;  %s30_s18 = int_to_ptr.vmem [resolvable:$true] %s29_s18 }
   0x3   :  { %s792_s19 = scalar_lea.vmem %s30_s18, 2048  ;;  %p797_p1 = scmp.lt.s32.totalorder %s30_s18, %s30_s18 }
   0x4   :  { %p793_p0 = scmp.ne.s32.totalorder %s30_s18, %s792_s19  ;;  %p798_p2 = scmp.lt.s32.totalorder %s792_s19, %s792_s19 }
   0x6   :  { %p799_p3 = por %p798_p2, %p797_p1 }
   0x8   :  { %p800_p4 = pnand %p799_p3, %p793_p0 }
   0xa   :  { %803 = shalt.err (!%p800_p4)
}
   0xb   :  { %s829_s20 = smov 128   ;;  %s830_s21 = smov 8  }
   0xc   :  { %35 = dma.hbm_to_vmem [thread:$0]  %s974_s3, 2048, %s30_s18, [#allocation3], %s829_s20, %s829_s20, %s830_s21  }
   0xd   :  { %s831_s24 = smov [#allocation4]  }
   0xe   :  { %s43_s25 = sshll.u32 %s831_s24, 4  ;;  %s44_s25 = int_to_ptr.vmem [resolvable:$true] %s43_s25 }
   0xf   :  { %s812_s26 = scalar_lea.vmem %s44_s25, 2048  ;;  %p817_p6 = scmp.lt.s32.totalorder %s44_s25, %s44_s25 }
  0x10   :  { %p813_p5 = scmp.ne.s32.totalorder %s44_s25, %s812_s26  ;;  %p818_p7 = scmp.lt.s32.totalorder %s812_s26, %s812_s26 }
  0x12   :  { %p819_p8 = por %p818_p7, %p817_p6 }
  0x14   :  { %p820_p9 = pnand %p819_p8, %p813_p5 }
  0x16   :  { %823 = shalt.err (!%p820_p9)
}
  0x17   :  { %s832_s27 = smov 64   ;;  %s833_s28 = smov 4  }
  0x18   :  { %49 = dma.hbm_to_vmem [thread:$0]  %s976_s5, 2048, %s44_s25, [#allocation5], %s832_s27, %s832_s27, %s833_s28  }
  0x19   :  { %824 = dma.done.wait [#allocation3], 2048  }
  0x1a   :  { %825 = vsyncadd [#allocation3], 4294965248 }
  0x1b   :  { %826 = dma.done.wait [#allocation5], 2048  }
  0x1c   :  { %827 = vsyncadd [#allocation5], 4294965248  ;;  %v834_v0 = vmov 0.0   ;;  %vm835_vm0 = vmmov 0   ;;  %v69_v1 = vld [vmem:[%s972_s1 + $0x8] sm:$0xff]  ;;  %v68_v2 = vld [vmem:[%s972_s1] sm:$0xff]  ;;  %v171_v47 = vlaneseq }
  0x1d   :  { %700 = vmatprep.subr.mxu0 %v834_v0  ;;  %704 = vmatprep.mubr.msk.f32.mxu0 %vm835_vm0, %v834_v0  ;;  %v67_v3 = vld [vmem:[%s971_s0] sm:$0xff]  ;;  %vm77_vm1 = vcmask 130048   ;;  %v736_v4 = vld [vmem:[#allocation2 + $0x74] ss:$8 sps:$4 sm:$0xff]   ;;  %v738_v5 = vld [vmem:[#allocation2 + $0x70] ss:$8 sps:$4 sm:$0xff]  }
  0x1e   :  { %701 = vmatpush3.msra.mxu0 %v69_v1  ;;  %261 = vmatprep.subr.bf16.mxu1 %v736_v4  ;;  %v739_v6 = vld [vmem:[#allocation2 + $0x64] ss:$8 sps:$4 sm:$0xff]   ;;  %v741_v7 = vld [vmem:[#allocation2 + $0x60] ss:$8 sps:$4 sm:$0xff]   ;;  %v742_v8 = vld [vmem:[#allocation2 + $0x54] ss:$8 sps:$4 sm:$0xff]  }
  0x1f   :  { %702 = vmatprep.subr.mxu0 %v834_v0  ;;  %262 = vmatpush1.bf16.msra.mxu1 %v738_v5  ;;  %v744_v9 = vld [vmem:[#allocation2 + $0x50] ss:$8 sps:$4 sm:$0xff]   ;;  %v745_v10 = vld [vmem:[#allocation2 + $0x44] ss:$8 sps:$4 sm:$0xff]   ;;  %v747_v11 = vld [vmem:[#allocation2 + $0x40] ss:$8 sps:$4 sm:$0xff]  }
  0x20   :  { %703 = vmatpush3.msra.mxu0 %v68_v2  ;;  %263 = vmatprep.subr.bf16.mxu1 %v739_v6  ;;  %v748_v12 = vld [vmem:[#allocation2 + $0x34] ss:$8 sps:$4 sm:$0xff]   ;;  %v750_v13 = vld [vmem:[#allocation2 + $0x30] ss:$8 sps:$4 sm:$0xff]   ;;  %v751_v14 = vld [vmem:[#allocation2 + $0x24] ss:$8 sps:$4 sm:$0xff]  }
  0x21   :  { %705 = vmatmul.mubr.msk.f32.vlgmr.msra.gmra.mxu0 %vm77_vm1, %v67_v3  ;;  %v753_v15 = vld [vmem:[#allocation2 + $0x20] ss:$8 sps:$4 sm:$0xff]   ;;  %v754_v16 = vld [vmem:[#allocation2 + $0x14] ss:$8 sps:$4 sm:$0xff]   ;;  %v756_v17 = vld [vmem:[#allocation2 + $0x10] ss:$8 sps:$4 sm:$0xff]  }
  0x22   :  { %v757_v18 = vld [vmem:[#allocation2 + $0x4] ss:$8 sps:$4 sm:$0xff]   ;;  %v759_v19 = vld [vmem:[#allocation2] ss:$8 sps:$4 sm:$0xff]   ;;  %v836_v20 = vmov 0   ;;  %v760_v21 = vld [vmem:[#allocation4 + $0x78] sm:$0xff]  }
  0x23   :  { %264 = vmatpush1.bf16.msra.mxu1 %v741_v7  ;;  %293 = vmatprep.mubr.bf16.mxu1 %v836_v20  ;;  %v761_v22 = vld [vmem:[#allocation4 + $0x38] sm:$0xff]   ;;  %v762_v23 = vld [vmem:[#allocation4 + $0x70] sm:$0xff]   ;;  %v764_v25 = vld [vmem:[#allocation4 + $0x68] sm:$0xff]   ;;  %v172_v48 = vshrl.u32 %v171_v47, 7  ;;  %vm612_vm2 = vcmask 15360  }
  0x24   :  { %265 = vmatprep.subr.bf16.mxu1 %v742_v8  ;;  %669 = vmatprep.subr.bf16.mxu0 %v760_v21  ;;  %v763_v24 = vld [vmem:[#allocation4 + $0x30] sm:$0xff]   ;;  %v765_v26 = vld [vmem:[#allocation4 + $0x28] sm:$0xff]   ;;  %v766_v27 = vld [vmem:[#allocation4 + $0x60] sm:$0xff]  }
  0x25   :  { %670 = vmatpush3.bf16.msra.mxu0 %v761_v22  ;;  %v767_v28 = vld [vmem:[#allocation4 + $0x20] sm:$0xff]   ;;  %v768_v29 = vld [vmem:[#allocation4 + $0x58] sm:$0xff]   ;;  %v770_v31 = vld [vmem:[#allocation4 + $0x50] sm:$0xff]   ;;  %v173_v49 = vsub.s32 0, %v172_v48  ;;  %v177_v51 = vsub.s32 1, %v172_v48 }
  0x26   :  { %671 = vmatprep.subr.bf16.mxu0 %v762_v23  ;;  %v769_v30 = vld [vmem:[#allocation4 + $0x18] sm:$0xff]   ;;  %v771_v32 = vld [vmem:[#allocation4 + $0x10] sm:$0xff]   ;;  %v620_v33 = vld [vmem:[%s973_s2] ss:$0 sm:$0xff] }
  0x27   :  { %266 = vmatpush1.bf16.msra.mxu1 %v744_v9  ;;  %v772_v39 = vld [vmem:[#allocation4 + $0x48] sm:$0xff]   ;;  %v774_v41 = vld [vmem:[#allocation4 + $0x40] sm:$0xff]   ;;  %v776_v43 = vld [vmem:[%s980_s9 + $0x38] sm:$0xff]  }
  0x28   :  { %267 = vmatprep.subr.bf16.mxu1 %v745_v10  ;;  %v773_v40 = vld [vmem:[#allocation4 + $0x8] sm:$0xff]   ;;  %v775_v42 = vld [vmem:[#allocation4] sm:$0xff]   ;;  %v777_v44 = vld [vmem:[%s980_s9 + $0x30] sm:$0xff]  }
  0x29   :  { %672 = vmatpush3.bf16.msra.mxu0 %v763_v24  ;;  %v778_v45 = vld [vmem:[%s980_s9 + $0x28] sm:$0xff]   ;;  %v779_v46 = vld [vmem:[%s980_s9 + $0x20] sm:$0xff]   ;;  %v780_v1 = vld [vmem:[%s980_s9 + $0x18] sm:$0xff]  }
  0x2a   :  { %673 = vmatprep.subr.bf16.mxu0 %v764_v25  ;;  %v169_v50 = vld [vmem:[%s975_s4] sm:$0x3]  ;;  %v781_v2 = vld [vmem:[%s980_s9 + $0x10] sm:$0xff]   ;;  %v782_v3 = vld [vmem:[%s980_s9 + $0x8] sm:$0xff]  }
  0x2b   :  { %268 = vmatpush1.bf16.msra.mxu1 %v747_v11  ;;  %v174_v52 = vrot.slane %v169_v50, %v173_v49  ;;  %v178_v53 = vrot.slane %v169_v50, %v177_v51  ;;  %v783_v4 = vld [vmem:[%s980_s9] sm:$0xff]  }
  0x2c   :  { %269 = vmatprep.subr.bf16.mxu1 %v748_v12  ;;  %v638_v6 = vld [vmem:[%s977_s6] ss:$0 sm:$0xff] }
  0x2d   :  { %674 = vmatpush3.bf16.msra.mxu0 %v765_v26  ;;  %v655_v11 = vld [vmem:[%s978_s7] ss:$0 sm:$0xff] }
  0x2e   :  { %675 = vmatprep.subr.bf16.mxu0 %v766_v27 }
  0x2f   :  { %270 = vmatpush1.bf16.msra.mxu1 %v750_v13  ;;  %v656_v13 = vld [vmem:[%s979_s8] ss:$0 sm:$0xff] }
  0x30   :  { %271 = vmatprep.subr.bf16.mxu1 %v751_v14 }
  0x31   :  { %676 = vmatpush3.bf16.msra.mxu0 %v767_v28 }
  0x32   :  { %677 = vmatprep.subr.bf16.mxu0 %v768_v29 }
  0x33   :  { %272 = vmatpush1.bf16.msra.mxu1 %v753_v15 }
  0x34   :  { %273 = vmatprep.subr.bf16.mxu1 %v754_v16 }
  0x35   :  { %678 = vmatpush3.bf16.msra.mxu0 %v769_v30 }
  0x36   :  { %679 = vmatprep.subr.bf16.mxu0 %v770_v31 }
  0x37   :  { %274 = vmatpush1.bf16.msra.mxu1 %v756_v17 }
  0x38   :  { %275 = vmatprep.subr.bf16.mxu1 %v757_v18  ;;  %v657_v18 = vld [vmem:[%s981_s10] ss:$0 sm:$0xff] }
  0x39   :  { %680 = vmatpush3.bf16.msra.mxu0 %v771_v32 }
  0x3a   :  { %681 = vmatprep.subr.bf16.mxu0 %v772_v39 }
  0x3b   :  { %276 = vmatpush1.bf16.msra.mxu1 %v759_v19 }
  0x3c   :  { %707 = vmatprep.subr.bf16.mxu1 %v834_v0 }
  0x3d   :  { %682 = vmatpush3.bf16.msra.mxu0 %v773_v40 }
  0x3e   :  { %683 = vmatprep.subr.bf16.mxu0 %v774_v41 }
  0x41   :  { %684 = vmatpush3.bf16.msra.mxu0 %v775_v42 }
  0xe1   :  { %v147_v34 = vpop.f32.mrf.mxu0 }
  0xe2   :  { %v148_v35 = vadd.f32 %v620_v33, %v147_v34 }
  0xe3   :  { %v706_v36 = vpop.f32.mrf.mxu0 }
  0xe4   :  { %v151_v37 = vmax.f32 %v148_v35, 0.0 }
  0xe6   :  { %v152_v38 = vpack.c.bf16 %v151_v37, %v151_v37 }
  0xe8   :  { %294 = vmatmul.mubr.bf16.vlgmr.msra.gmra.mxu1 %v152_v38 }
  0xe9   :  { %723 = vmatprep.mubr.msk.bf16.mxu1 %vm835_vm0, %v834_v0  ;;  %708 = vmatpush3.bf16.msra.mxu1 %v776_v43 }
  0xea   :  { %709 = vmatprep.subr.bf16.mxu1 %v834_v0 }
  0xed   :  { %710 = vmatpush3.bf16.msra.mxu1 %v777_v44 }
  0xee   :  { %711 = vmatprep.subr.bf16.mxu1 %v834_v0 }
  0xf1   :  { %712 = vmatpush3.bf16.msra.mxu1 %v778_v45 }
  0xf2   :  { %713 = vmatprep.subr.bf16.mxu1 %v834_v0 }
  0xf5   :  { %714 = vmatpush3.bf16.msra.mxu1 %v779_v46 }
  0xf6   :  { %715 = vmatprep.subr.bf16.mxu1 %v834_v0 }
  0xf9   :  { %716 = vmatpush3.bf16.msra.mxu1 %v780_v1 }
  0xfa   :  { %717 = vmatprep.subr.bf16.mxu1 %v834_v0 }
  0xfd   :  { %718 = vmatpush3.bf16.msra.mxu1 %v781_v2 }
  0xfe   :  { %719 = vmatprep.subr.bf16.mxu1 %v834_v0 }
 0x101   :  { %720 = vmatpush3.bf16.msra.mxu1 %v782_v3 }
 0x102   :  { %721 = vmatprep.subr.bf16.mxu1 %v834_v0 }
 0x105   :  { %722 = vmatpush3.bf16.msra.mxu1 %v783_v4 }
 0x1a8   :  { %v295_v54 = vpop.f32.mrf.mxu1 }
 0x1a9   :  { %v296_v55 = vadd.f32 %v295_v54, %v174_v52 }
 0x1aa   :  { %v297_v56 = vpop.f32.mrf.mxu1 }
 0x1ab   :  { %v298_v57 = vadd.f32 %v297_v56, %v178_v53  ;;  %v302_v58 = vmax.f32 %v296_v55, 0.0 }
 0x1ac   :  { %v299_v59 = vpop.f32.mrf.mxu1 }
 0x1ad   :  { %v303_v60 = vmax.f32 %v298_v57, 0.0  ;;  %v304_v63 = vpack.c.bf16 %v302_v58, %v302_v58 }
 0x1ae   :  { %v300_v61 = vpop.f32.mrf.mxu1 }
 0x1af   :  { %v305_v62 = vpack.c.bf16 %v303_v60, %v303_v60 }
 0x1b1   :  { %473 = vmatprep.mubr.bf16.mxu0 %v305_v62 }
 0x1b2   :  { %474 = vmatmul.mubr.bf16.vlgmr.msra.gmra.mxu0 %v304_v63 }
 0x272   :  { %v685_v5 = vpop.f32.mrf.mxu0 }
 0x274   :  { %v686_v7 = vpop.f32.mrf.mxu0 }
 0x275   :  { %v687_v8 = vadd.f32 %v686_v7, %v685_v5 }
 0x276   :  { %v688_v9 = vpop.f32.mrf.mxu0 }
 0x277   :  { %v476_v10 = vadd.f32 %v687_v8, %v638_v6 }
 0x278   :  { %v689_v12 = vpop.f32.mrf.mxu0 }
 0x279   :  { %v481_v0 = vmax.f32 %v476_v10, 0.0 }
 0x27b   :  { %v489_v14 = vmul.f32 %v655_v11, %v481_v0 }
 0x27d   :  { %v497_v15 = vadd.f32 %v656_v13, %v489_v14 }
 0x27f   :  { %v498_v16 = vmax.f32 %v497_v15, 0.0 }
 0x281   :  { %v499_v17 = vpack.c.bf16 %v498_v16, %v498_v16 }
 0x283   :  { %724 = vmatmul.mubr.bf16.vlgmr.msra.gmra.mxu1 %v499_v17 }
 0x343   :  { %v605_v19 = vpop.f32.mrf.mxu1 }
 0x344   :  { %v606_v20 = vadd.f32 %v657_v18, %v605_v19 }
 0x345   :  { %v725_v21 = vpop.f32.mrf.mxu1 }
 0x346   :  { %v611_v22 = vmax.f32 %v606_v20, 0.0 }
 0x347   :  { %v608_v23 = vpop.f32.mrf.mxu1 }
 0x348   :  { %613 = vst.msk [vmem:[%s982_s11] sm:$0xff] %vm612_vm2, %v611_v22 }
 0x349   :  { %v726_v24 = vpop.f32.mrf.mxu1 }
 0x34a   :  { %618 = vsyncpa [#allocation3], 1 }
 0x34b   :  { %619 = vsyncpa [#allocation5], 1 }

</bundles_post_ra>
